<compile_context>
chip_gen: v5e
topology: v5e:2x2
jax: 0.10.0
libtpu: 0.0.40
codegen_flags: <defaults>
</compile_context>

<pallas_src>
import functools

import jax
import jax.numpy as jnp
import numpy as np
from jax.experimental import pallas as pl
from jax.experimental.pallas import tpu as pltpu

# ----------------------------- config (small) -----------------------------
N = 2            # batch
L = 8            # sequence length
D = 32           # hidden size (padded to 128 lanes inside the wrapper)
LN_EPS = 1e-12   # config.layer_norm_eps

LANE = 128       # TPU lane width
ROW_ALIGN = 16   # sublane alignment safe for bf16-packed tiles
BLOCK_M_MAX = 512  # row-tile cap: >=2 grid steps at real M (v7x megacore) + VMEM-safe


# ------------------------------- kernel -----------------------------------
def bert_self_output_kernel(h_ref, x_ref, w_ref, vec_ref, out_ref, *, d_real):
    # h: (block_m, Dp) bf16   x: (block_m, Dp) f32   w: (Dp, Dp) bf16
    # vec: (3, Dp) f32 packed rows = [dense bias; LN gamma; LN beta]
    bias = vec_ref[0:1, :]    # (1, Dp)
    gamma = vec_ref[1:2, :]   # (1, Dp)
    beta = vec_ref[2:3, :]    # (1, Dp)

    # Dense projection on the MXU: bf16 operands, f32 accumulation.
    y = jnp.dot(h_ref[...], w_ref[...], preferred_element_type=jnp.float32) + bias

    # TODO(synk): nn.Dropout is identity in eval mode; training-mode dropout
    # (pltpu.prng_seed + pltpu.prng_random_bits) is intentionally omitted.

    # Residual add in f32.
    res = y + x_ref[...].astype(jnp.float32)

    # One-pass LayerNorm statistics over the real hidden size; padded lanes are
    # exact zeros so they do not perturb the sums.
    inv_d = 1.0 / float(d_real)
    s1 = jnp.sum(res, axis=-1, keepdims=True)
    s2 = jnp.sum(res * res, axis=-1, keepdims=True)
    mean = s1 * inv_d
    var = jnp.maximum(s2 * inv_d - mean * mean, 0.0)
    normed = (res - mean) * jax.lax.rsqrt(var + LN_EPS)
    out_ref[...] = (normed * gamma + beta).astype(out_ref.dtype)


# ------------------------------- wrapper -----------------------------------
@jax.jit
def bert_self_output(hidden_states, input_tensor, w, b, gamma, beta):
    n, l, d = hidden_states.shape
    m = n * l

    # Lane-dense hidden dim (multiple of 128).
    d_pad = pl.cdiv(d, LANE) * LANE

    # Row tiling: cap block_m, round rows up so cdiv grid never drops a tail tile.
    block_m = min(BLOCK_M_MAX, pl.cdiv(m, ROW_ALIGN) * ROW_ALIGN)
    m_pad = pl.cdiv(m, block_m) * block_m
    grid_m = m_pad // block_m

    # Pad + cast streamed operands.  h and W go to bf16 (MXU fast path, half the
    # HBM bytes); the residual and the small packed vectors stay f32.
    h2 = jnp.pad(hidden_states.reshape(m, d),
                 ((0, m_pad - m), (0, d_pad - d))).astype(jnp.bfloat16)
    x2 = jnp.pad(input_tensor.reshape(m, d),
                 ((0, m_pad - m), (0, d_pad - d))).astype(jnp.float32)
    w_p = jnp.pad(w, ((0, d_pad - d), (0, d_pad - d))).astype(jnp.bfloat16)
    vec = jnp.pad(jnp.stack([b, gamma, beta], axis=0).astype(jnp.float32),
                  ((0, 0), (0, d_pad - d)))

    out_bytes = m_pad * d_pad * jnp.dtype(hidden_states.dtype).itemsize
    cost = pl.CostEstimate(
        flops=2 * m_pad * d_pad * d_pad,
        transcendentals=0,
        bytes_accessed=(h2.size * 2 + x2.size * 4 + w_p.size * 2
                        + vec.size * 4 + out_bytes),
    )

    out = pl.pallas_call(
        functools.partial(bert_self_output_kernel, d_real=d),
        out_shape=jax.ShapeDtypeStruct((m_pad, d_pad), hidden_states.dtype),
        grid=(grid_m,),
        in_specs=[
            pl.BlockSpec((block_m, d_pad), lambda i: (i, 0)),   # hidden_states tile
            pl.BlockSpec((block_m, d_pad), lambda i: (i, 0)),   # residual tile
            pl.BlockSpec((d_pad, d_pad), lambda i: (0, 0)),     # W: VMEM-resident
            pl.BlockSpec((3, d_pad), lambda i: (0, 0)),         # [bias;gamma;beta]
        ],
        out_specs=pl.BlockSpec((block_m, d_pad), lambda i: (i, 0)),
        compiler_params=pltpu.CompilerParams(
            dimension_semantics=("parallel",)),
        cost_estimate=cost,
    )(h2, x2, w_p, vec)

    return out[:m, :d].reshape(n, l, d)


# ------------------------- pure-JAX reference -------------------------------
def bert_self_output_ref(hidden_states, input_tensor, w, b, gamma, beta):
    y = hidden_states @ w + b
    res = y + input_tensor
    mean = jnp.mean(res, axis=-1, keepdims=True)
    var = jnp.mean((res - mean) ** 2, axis=-1, keepdims=True)
    return (res - mean) / jnp.sqrt(var + LN_EPS) * gamma + beta


# --------------------------------- main -------------------------------------
if __name__ == "__main__":
    key = jax.random.PRNGKey(0)
    keys = jax.random.split(key, 6)

    hidden_states = jax.random.normal(keys[0], (N, L, D), dtype=jnp.float32)
    input_tensor = jax.random.normal(keys[1], (N, L, D), dtype=jnp.float32)

    scale = 0.02
    # nn.Linear weight stored pre-transposed: (in_features, out_features)
    w = scale * jax.random.normal(keys[2], (D, D), dtype=jnp.float32)
    b = scale * jax.random.normal(keys[3], (D,), dtype=jnp.float32)
    gamma = 1.0 + 0.1 * jax.random.normal(keys[4], (D,), dtype=jnp.float32)
    beta = 0.1 * jax.random.normal(keys[5], (D,), dtype=jnp.float32)

    out = bert_self_output(hidden_states, input_tensor, w, b, gamma, beta)
    out = jax.block_until_ready(out)

    ref = bert_self_output_ref(hidden_states, input_tensor, w, b, gamma, beta)
    # Tolerance accounts for the bf16 matmul operands (f32 accumulation); the
    # residual / LayerNorm path stays f32 so the error is ~1e-3 absolute.
    np.testing.assert_allclose(np.asarray(out), np.asarray(ref), rtol=1e-2, atol=1e-2)

    print("KERNEL_OK")
</pallas_src>

<mosaic_0001>
module attributes {stable_mosaic.version = 11 : i64} {
  func.func @bert_self_output_kernel(%arg0: i32, %arg1: memref<16x128xbf16, #tpu.memory_space<vmem>>, %arg2: memref<16x128xf32, #tpu.memory_space<vmem>>, %arg3: memref<128x128xbf16, #tpu.memory_space<vmem>>, %arg4: memref<3x128xf32, #tpu.memory_space<vmem>>, %arg5: memref<16x128xf32, #tpu.memory_space<vmem>>) attributes {dimension_semantics = [#tpu.dimension_semantics<parallel>], iteration_bounds = array<i64: 1>, scalar_prefetch = 0 : i64, scratch_operands = 0 : i64, tpu.core_type = #tpu.core_type<tc>, window_params = [{transform_indices = @transform_0, window_bounds = array<i64: 16, 128>}, {transform_indices = @transform_1, window_bounds = array<i64: 16, 128>}, {pipeline_mode = #tpu.pipeline_mode<synchronous>, transform_indices = @transform_2, window_bounds = array<i64: 128, 128>}, {pipeline_mode = #tpu.pipeline_mode<synchronous>, transform_indices = @transform_3, window_bounds = array<i64: 3, 128>}, {transform_indices = @transform_4, window_bounds = array<i64: 16, 128>}]} {
    %c0 = arith.constant 0 : index
    %c0_0 = arith.constant 0 : index
    %0 = vector.load %arg4[%c0, %c0_0] : memref<3x128xf32, #tpu.memory_space<vmem>>, vector<1x128xf32>
    %c1 = arith.constant 1 : index
    %c0_1 = arith.constant 0 : index
    %1 = vector.load %arg4[%c1, %c0_1] : memref<3x128xf32, #tpu.memory_space<vmem>>, vector<1x128xf32>
    %c2 = arith.constant 2 : index
    %c0_2 = arith.constant 0 : index
    %2 = vector.load %arg4[%c2, %c0_2] : memref<3x128xf32, #tpu.memory_space<vmem>>, vector<1x128xf32>
    %c0_3 = arith.constant 0 : index
    %c0_4 = arith.constant 0 : index
    %3 = vector.load %arg1[%c0_3, %c0_4] : memref<16x128xbf16, #tpu.memory_space<vmem>>, vector<16x128xbf16>
    %c0_5 = arith.constant 0 : index
    %c0_6 = arith.constant 0 : index
    %4 = vector.load %arg3[%c0_5, %c0_6] : memref<128x128xbf16, #tpu.memory_space<vmem>>, vector<128x128xbf16>
    %cst = arith.constant dense<0.000000e+00> : vector<16x128xf32>
    %5 = tpu.matmul %3, %4, %cst {dimension_numbers = #tpu.dot_dimension_numbers<[1], [0], [0], [1], [0, 0, 1, 1], [], []>} : vector<16x128xbf16>, vector<128x128xbf16>, vector<16x128xf32> -> vector<16x128xf32>
    %6 = vector.broadcast %0 : vector<1x128xf32> to vector<16x128xf32>
    %7 = arith.addf %5, %6 : vector<16x128xf32>
    %c0_7 = arith.constant 0 : index
    %c0_8 = arith.constant 0 : index
    %8 = vector.load %arg2[%c0_7, %c0_8] : memref<16x128xf32, #tpu.memory_space<vmem>>, vector<16x128xf32>
    %9 = arith.addf %7, %8 : vector<16x128xf32>
    %cst_9 = arith.constant dense<0.000000e+00> : vector<16xf32>
    %10 = vector.multi_reduction <add>, %9, %cst_9 [1] : vector<16x128xf32> to vector<16xf32>
    %11 = vector.shape_cast %10 : vector<16xf32> to vector<16x1xf32>
    %12 = arith.mulf %9, %9 : vector<16x128xf32>
    %cst_10 = arith.constant dense<0.000000e+00> : vector<16xf32>
    %13 = vector.multi_reduction <add>, %12, %cst_10 [1] : vector<16x128xf32> to vector<16xf32>
    %14 = vector.shape_cast %13 : vector<16xf32> to vector<16x1xf32>
    %cst_11 = arith.constant 3.125000e-02 : f32
    %15 = vector.broadcast %cst_11 : f32 to vector<16x1xf32>
    %16 = arith.mulf %11, %15 : vector<16x1xf32>
    %cst_12 = arith.constant 3.125000e-02 : f32
    %17 = vector.broadcast %cst_12 : f32 to vector<16x1xf32>
    %18 = arith.mulf %14, %17 : vector<16x1xf32>
    %19 = arith.mulf %16, %16 : vector<16x1xf32>
    %20 = arith.subf %18, %19 : vector<16x1xf32>
    %cst_13 = arith.constant 0.000000e+00 : f32
    %21 = vector.broadcast %cst_13 : f32 to vector<16x1xf32>
    %22 = arith.maximumf %20, %21 : vector<16x1xf32>
    %23 = vector.broadcast %16 : vector<16x1xf32> to vector<16x128xf32>
    %24 = arith.subf %9, %23 : vector<16x128xf32>
    %cst_14 = arith.constant 9.99999996E-13 : f32
    %25 = vector.broadcast %cst_14 : f32 to vector<16x1xf32>
    %26 = arith.addf %22, %25 : vector<16x1xf32>
    %27 = math.rsqrt %26 : vector<16x1xf32>
    %28 = vector.broadcast %27 : vector<16x1xf32> to vector<16x128xf32>
    %29 = arith.mulf %24, %28 : vector<16x128xf32>
    %30 = vector.broadcast %1 : vector<1x128xf32> to vector<16x128xf32>
    %31 = arith.mulf %29, %30 : vector<16x128xf32>
    %32 = vector.broadcast %2 : vector<1x128xf32> to vector<16x128xf32>
    %33 = arith.addf %31, %32 : vector<16x128xf32>
    %c0_15 = arith.constant 0 : index
    %c0_16 = arith.constant 0 : index
    %34 = vector.load %arg5[%c0_15, %c0_16] : memref<16x128xf32, #tpu.memory_space<vmem>>, vector<16x128xf32>
    tpu.vector_store %arg5[%c0_15, %c0_16], %33 {strides = array<i32>} : memref<16x128xf32, #tpu.memory_space<vmem>>, vector<16x128xf32>,
    return
  }
  func.func @transform_0(%arg0: i32) -> (i32, i32) {
    %c0_i32 = arith.constant 0 : i32
    %c0_i32_0 = arith.constant 0 : i32
    return %arg0, %c0_i32 : i32, i32
  }
  func.func @transform_1(%arg0: i32) -> (i32, i32) {
    %c0_i32 = arith.constant 0 : i32
    %c0_i32_0 = arith.constant 0 : i32
    return %arg0, %c0_i32 : i32, i32
  }
  func.func @transform_2(%arg0: i32) -> (i32, i32) {
    %c0_i32 = arith.constant 0 : i32
    %c0_i32_0 = arith.constant 0 : i32
    %c0_i32_1 = arith.constant 0 : i32
    return %c0_i32, %c0_i32_0 : i32, i32
  }
  func.func @transform_3(%arg0: i32) -> (i32, i32) {
    %c0_i32 = arith.constant 0 : i32
    %c0_i32_0 = arith.constant 0 : i32
    %c0_i32_1 = arith.constant 0 : i32
    return %c0_i32, %c0_i32_0 : i32, i32
  }
  func.func @transform_4(%arg0: i32) -> (i32, i32) {
    %c0_i32 = arith.constant 0 : i32
    %c0_i32_0 = arith.constant 0 : i32
    return %arg0, %c0_i32 : i32, i32
  }
}

</mosaic_0001>

<bundles_post_ra>
// kernel: bert_self_output.1
= control target key start
LH: loop header
LB: loop body
LE: loop exit
PB: predicated region body
PF: predicated region fallthrough
CT: control target
= control target key end

     0   :  { %s294_s2 = inlined_call_operand.vmem [shape: bf16[128,128], index: 2, kind: input, shape index: {}]   ;;  %s295_s3 = inlined_call_operand.vmem [shape: f32[3,128], index: 3, kind: input, shape index: {}]   ;;  %s296_s0 = inlined_call_operand.vmem [shape: bf16[16,128], index: 0, kind: input, shape index: {}]   ;;  %s297_s1 = inlined_call_operand.vmem [shape: f32[16,128], index: 1, kind: input, shape index: {}]   ;;  %s298_s4 = inlined_call_operand.vmem [shape: f32[16,128], index: 4, kind: output, shape index: {}]  }
   0x1   :  { %v213_v0 = vld [vmem:[%s294_s2 + $0x38] sm:$0xff]  ;;  %v212_v1 = vld [vmem:[%s294_s2 + $0x30] sm:$0xff]  ;;  %v211_v2 = vld [vmem:[%s294_s2 + $0x28] sm:$0xff] }
   0x2   :  { %93 = vmatpush.bf16.msra.mxu0 %v213_v0  ;;  %v210_v3 = vld [vmem:[%s294_s2 + $0x20] sm:$0xff]  ;;  %v209_v4 = vld [vmem:[%s294_s2 + $0x18] sm:$0xff]  ;;  %v208_v5 = vld [vmem:[%s294_s2 + $0x10] sm:$0xff] }
   0x3   :  { %v207_v6 = vld [vmem:[%s294_s2 + $0x8] sm:$0xff]  ;;  %v206_v7 = vld [vmem:[%s294_s2] sm:$0xff] }
   0x4   :  { %v205_v8 = vld [vmem:[%s296_s0] sm:$0xff]  ;;  %v108_v16 = vld [vmem:[%s297_s1 + $0x8] sm:$0xff] }
   0x5   :  { %v214_v9 = vld [vmem:[%s295_s3] ss:$0 sm:$0xff]  ;;  %v215_v43 = vld [vmem:[%s295_s3 + $0x1] ss:$0 sm:$0xff]  ;;  %v216_v47 = vld [vmem:[%s295_s3 + $0x2] ss:$0 sm:$0xff] }
   0x6   :  { %94 = vmatpush.bf16.msra.mxu0 %v212_v1  ;;  %v107_v11 = vld [vmem:[%s297_s1] sm:$0xff] }
   0xa   :  { %95 = vmatpush.bf16.msra.mxu0 %v211_v2 }
   0xe   :  { %96 = vmatpush.bf16.msra.mxu0 %v210_v3 }
  0x12   :  { %97 = vmatpush.bf16.msra.mxu0 %v209_v4 }
  0x16   :  { %98 = vmatpush.bf16.msra.mxu0 %v208_v5 }
  0x1a   :  { %99 = vmatpush.bf16.msra.mxu0 %v207_v6 }
  0x1e   :  { %100 = vmatpush.bf16.msra.mxu0 %v206_v7 }
  0x21   :  { %101 = vmatmul.bf16.vlgmr.msra.gmra.mxu0 %v205_v8 }
  0x9e   :  { %v102_v10 = vpop.f32.mrf.mxu0 }
  0x9f   :  { %v103_v12 = vadd.f32 %v214_v9, %v102_v10 }
  0xa1   :  { %v109_v13 = vadd.f32 %v107_v11, %v103_v12 }
  0xa3   :  { %111 = vadd.xlane.f32.xlu0 %v109_v13  ;;  %v115_v14 = vmul.f32 %v109_v13, %v109_v13 }
  0xa5   :  { %117 = vadd.xlane.f32.xlu1 %v115_v14 }
  0xa6   :  { %v104_v15 = vpop.f32.mrf.mxu0 }
  0xa7   :  { %v105_v17 = vadd.f32 %v214_v9, %v104_v15 }
  0xa9   :  { %v110_v18 = vadd.f32 %v108_v16, %v105_v17 }
  0xab   :  { %113 = vadd.xlane.f32.xlu0 %v110_v18  ;;  %v116_v19 = vmul.f32 %v110_v18, %v110_v18 }
  0xad   :  { %119 = vadd.xlane.f32.xlu1 %v116_v19 }
 0x116   :  { %v112_v20 = vpop.xlane.xlu0 %111 }
 0x117   :  { %v121_v21 = vmul.f32 0.03125, %v112_v20 }
 0x118   :  { %v118_v22 = vpop.xlane.xlu1 %117 }
 0x119   :  { %v125_v23 = vmul.f32 %v121_v21, %v121_v21  ;;  %v123_v24 = vmul.f32 0.03125, %v118_v22  ;;  %v131_v44 = vsub.f32 %v109_v13, %v121_v21 }
 0x11b   :  { %v127_v25 = vsub.f32 %v123_v24, %v125_v23 }
 0x11d   :  { %v129_v26 = vmax.f32 %v127_v25, 0.0 }
 0x11e   :  { %v114_v27 = vpop.xlane.xlu0 %113 }
 0x11f   :  { %v133_v28 = vadd.f32 1e-12, %v129_v26  ;;  %v122_v29 = vmul.f32 0.03125, %v114_v27 }
 0x120   :  { %v120_v30 = vpop.xlane.xlu1 %119 }
 0x121   :  { %217 = vrsqrt.f32 %v133_v28  ;;  %v126_v31 = vmul.f32 %v122_v29, %v122_v29  ;;  %v124_v32 = vmul.f32 0.03125, %v120_v30  ;;  %vm141_vm1 = vweird.f32 %v133_v28 }
 0x122   :  { %v132_v55 = vsub.f32 %v110_v18, %v122_v29 }
 0x123   :  { %v128_v33 = vsub.f32 %v124_v32, %v126_v31 }
 0x125   :  { %v130_v34 = vmax.f32 %v128_v33, 0.0 }
 0x127   :  { %v218_v35 = vpop.eup %217  ;;  %v134_v37 = vadd.f32 1e-12, %v130_v34 }
 0x128   :  { %v136_v36 = vmul.f32 %v218_v35, %v133_v28  ;;  %vm142_vm0 = vweird.f32 %v218_v35 }
 0x129   :  { %219 = vrsqrt.f32 %v134_v37  ;;  %vm143_vm2 = vmor %vm141_vm1, %vm142_vm0  ;;  %vm151_vm4 = vweird.f32 %v134_v37 }
 0x12a   :  { %v137_v38 = vmul.f32 %v218_v35, %v136_v36 }
 0x12c   :  { %v138_v39 = vmul.f32 0.5, %v137_v38 }
 0x12e   :  { %v139_v40 = vsub.f32 1.5, %v138_v39 }
 0x12f   :  { %v220_v41 = vpop.eup %219 }
 0x130   :  { %v140_v42 = vmul.f32 %v218_v35, %v139_v40  ;;  %v146_v45 = vmul.f32 %v220_v41, %v134_v37  ;;  %vm152_vm3 = vweird.f32 %v220_v41 }
 0x131   :  { %vm153_vm5 = vmor %vm151_vm4, %vm152_vm3 }
 0x132   :  { %v144_v46 = vsel %vm143_vm2, %v218_v35, %v140_v42  ;;  %v147_v49 = vmul.f32 %v220_v41, %v146_v45 }
 0x133   :  { %v155_v48 = vmul.f32 %v144_v46, %v131_v44 }
 0x134   :  { %v148_v51 = vmul.f32 0.5, %v147_v49 }
 0x135   :  { %v158_v50 = vmul.f32 %v215_v43, %v155_v48 }
 0x136   :  { %v149_v53 = vsub.f32 1.5, %v148_v51 }
 0x137   :  { %v161_v52 = vadd.f32 %v216_v47, %v158_v50 }
 0x138   :  { %v150_v54 = vmul.f32 %v220_v41, %v149_v53 }
 0x139   :  { %163 = vst [vmem:[%s298_s4] sm:$0xff] %v161_v52 }
 0x13a   :  { %v154_v56 = vsel %vm153_vm5, %v220_v41, %v150_v54 }
 0x13b   :  { %v156_v57 = vmul.f32 %v154_v56, %v132_v55 }
 0x13d   :  { %v159_v58 = vmul.f32 %v215_v43, %v156_v57 }
 0x13f   :  { %v162_v59 = vadd.f32 %v216_v47, %v159_v58 }
 0x141   :  { %164 = vst [vmem:[%s298_s4 + $0x8] sm:$0xff] %v162_v59 }

</bundles_post_ra>
